<compile_context>
chip_gen: v7x
topology: tpu7x:2x2x1
jax: 0.10.0
libtpu: 0.0.40
codegen_flags: <defaults>
</compile_context>

<pallas_src>
import jax
import jax.numpy as jnp
from jax.experimental import pallas as pl
from jax.experimental.pallas import tpu as pltpu


_VMEM_LIMIT_BYTES = 32 * 1024 * 1024          # scoped VMEM limit for the call
_XBUF_BUDGET_BYTES = 12 * 1024 * 1024         # per input block (x2 for double-buffer)


def _choose_tile_n(n_rows, seq, kw_dim, itemsize, vmem_budget_bytes=_XBUF_BUDGET_BYTES):
    """Largest row-tile whose lane/sublane-padded VMEM footprint fits the budget,
    capped so the grid keeps >=2 steps when there is enough work (v7x megacore)."""
    sublane = {4: 8, 2: 16, 1: 32}.get(itemsize, 8)
    padded_seq = -(-seq // sublane) * sublane
    padded_kw = -(-kw_dim // 128) * 128
    row_bytes = padded_seq * padded_kw * itemsize
    t = max(8, vmem_budget_bytes // max(row_bytes, 1))
    t = int(min(t, 4096))
    if n_rows >= 16:
        t = min(t, max(8, n_rows // 2))       # keep >= 2 grid steps
    t = max(8, (t // 8) * 8)                  # second-minor of output block: 8-aligned
    return n_rows if t >= n_rows else t


def _make_kernel(width):
    def kernel(x_ref, w_ref, b_ref, o_ref):
        # x_ref: [tile_n, seq, K*width] (VMEM, auto-pipelined)
        # w_ref: [width, C]  (LayerNorm-affine already folded in)
        # b_ref: [1, C]
        # o_ref: [tile_n, C]
        x = x_ref[:, :, :width]                                   # K=0 plane (static lane slice)

        # mean over the sequence axis, accumulated in f32
        m = jnp.mean(x, axis=1, dtype=jnp.float32)                # [tile_n, W]

        # LayerNorm statistics (eps=1e-5, biased variance); affine folded into W/b
        mu = jnp.mean(m, axis=-1, keepdims=True)
        var = jnp.mean((m - mu) * (m - mu), axis=-1, keepdims=True)
        xn = (m - mu) * jax.lax.rsqrt(var + 1e-5)

        # Dropout(0.5) is identity at inference time.

        out = jnp.dot(xn, w_ref[...].astype(jnp.float32),
                      preferred_element_type=jnp.float32)
        out = out + b_ref[...].astype(jnp.float32)
        o_ref[...] = out.astype(o_ref.dtype)

    return kernel


def classifier_forward(x, cls_tokens, gamma, beta, fc_w, fc_b, *, tile_n=None):
    """x: [B, clip, seq, K, width]; returns [B, clip, num_classes] (float32)."""
    # Mirrors the PyTorch `classifier.forward` debug print (cls_tokens is
    # otherwise unused, exactly as in the reference module).
    print('cls_tokens:  ', tuple(cls_tokens.shape))

    B, clip, seq, K, width = x.shape
    num_classes = fc_b.shape[-1]
    n_rows = B * clip
    kw_dim = K * width

    # Free reshape (merges only adjacent axes): [B,clip,seq,K,W] -> [N, seq, K*W].
    x3 = x.reshape(n_rows, seq, kw_dim)

    # Fold the LayerNorm affine into the Linear on the host:
    #   (xn*gamma + beta) @ W + b  ==  xn @ (gamma[:,None]*W) + (beta @ W + b)
    gamma_v = gamma.reshape(-1).astype(jnp.float32)
    beta_v = beta.reshape(-1).astype(jnp.float32)
    w32 = fc_w.astype(jnp.float32)
    w_fold = gamma_v[:, None] * w32                               # [W, C]
    b_fold = (fc_b.reshape(1, -1).astype(jnp.float32)
              + (beta_v @ w32)[None, :])                          # [1, C]

    if tile_n is None:
        tile_n = _choose_tile_n(n_rows, seq, kw_dim, x.dtype.itemsize)
    tile_n = min(int(tile_n), n_rows)
    if tile_n < n_rows:
        tile_n = max(8, (tile_n // 8) * 8)

    grid = (pl.cdiv(n_rows, tile_n),)
    kernel = _make_kernel(width)

    out = pl.pallas_call(
        kernel,
        out_shape=jax.ShapeDtypeStruct((n_rows, num_classes), jnp.float32),
        grid=grid,
        in_specs=[
            # Full trailing axis (K*W) -> contiguous DMA, auto double-buffered.
            pl.BlockSpec((tile_n, seq, kw_dim), lambda i: (i, 0, 0)),
            pl.BlockSpec((width, num_classes), lambda i: (0, 0)),   # folded W (resident)
            pl.BlockSpec((1, num_classes), lambda i: (0, 0)),       # folded b (resident)
        ],
        out_specs=pl.BlockSpec((tile_n, num_classes), lambda i: (i, 0)),
        compiler_params=pltpu.CompilerParams(
            dimension_semantics=("parallel",),
            vmem_limit_bytes=_VMEM_LIMIT_BYTES,
        ),
    )(x3, w_fold, b_fold)

    return out.reshape(B, clip, num_classes)


def _reference_forward(x, gamma, beta, fc_w, fc_b):
    """Plain-JAX reference of the PyTorch mean_classifier forward (eval mode)."""
    m = jnp.mean(x[:, :, :, 0, :].astype(jnp.float32), axis=2)   # [B, clip, W]
    mu = jnp.mean(m, axis=-1, keepdims=True)
    var = jnp.mean((m - mu) ** 2, axis=-1, keepdims=True)
    xn = (m - mu) / jnp.sqrt(var + 1e-5)
    xn = xn * gamma.reshape(-1) + beta.reshape(-1)
    return xn @ fc_w + fc_b.reshape(-1)


if __name__ == "__main__":
    # Small shapes consistent with the module:
    #   B=2, clip=4, seq=8, K=3 (only index 0 is used), width=32, num_classes=8
    B, clip, seq, K, width, num_classes = 2, 4, 8, 3, 32, 8

    key = jax.random.PRNGKey(0)
    kx, kc, kw, kx2 = jax.random.split(key, 4)

    x = jax.random.normal(kx, (B, clip, seq, K, width), dtype=jnp.float32)
    cls_tokens = jax.random.normal(kc, (B, clip, width), dtype=jnp.float32)

    # Deterministic parameter init (mirrors __init__):
    #   LayerNorm: weight=1, bias=0;  fc: weight ~ N(0, 0.02), bias = 0
    gamma = jnp.ones((1, width), dtype=jnp.float32)
    beta = jnp.zeros((1, width), dtype=jnp.float32)
    fc_w = 0.02 * jax.random.normal(kw, (width, num_classes), dtype=jnp.float32)
    fc_b = jnp.zeros((1, num_classes), dtype=jnp.float32)

    out = classifier_forward(x, cls_tokens, gamma, beta, fc_w, fc_b)
    out = jax.block_until_ready(out)
    ref = _reference_forward(x, gamma, beta, fc_w, fc_b)
    assert out.shape == (B, clip, num_classes)
    assert jnp.allclose(out, ref, atol=1e-4, rtol=1e-4), "mismatch vs reference (cfg 1)"

    # Second config exercises the multi-tile pipelined grid + ragged last tile
    # (N = 12 rows, tile_n = 8 -> grid of 2, remainder 4).
    B2, clip2 = 3, 4
    x2 = jax.random.normal(kx2, (B2, clip2, seq, K, width), dtype=jnp.float32)
    cls2 = jnp.zeros((B2, clip2, width), dtype=jnp.float32)
    out2 = classifier_forward(x2, cls2, gamma, beta, fc_w, fc_b, tile_n=8)
    out2 = jax.block_until_ready(out2)
    ref2 = _reference_forward(x2, gamma, beta, fc_w, fc_b)
    assert out2.shape == (B2, clip2, num_classes)
    assert jnp.allclose(out2, ref2, atol=1e-4, rtol=1e-4), "mismatch vs reference (cfg 2)"

    # Third config: non-trivial N so the auto tile-chooser keeps >=2 grid steps
    # and the LayerNorm-affine fold is exercised with non-unit gamma/beta.
    B3, clip3 = 8, 4                                  # N = 32 rows
    x3_in = jax.random.normal(jax.random.PRNGKey(7),
                              (B3, clip3, seq, K, width), dtype=jnp.float32)
    cls3 = jnp.zeros((B3, clip3, width), dtype=jnp.float32)
    gamma3 = 1.0 + 0.1 * jax.random.normal(jax.random.PRNGKey(8), (1, width), jnp.float32)
    beta3 = 0.05 * jax.random.normal(jax.random.PRNGKey(9), (1, width), jnp.float32)
    out3 = classifier_forward(x3_in, cls3, gamma3, beta3, fc_w, fc_b)
    out3 = jax.block_until_ready(out3)
    ref3 = _reference_forward(x3_in, gamma3, beta3, fc_w, fc_b)
    assert out3.shape == (B3, clip3, num_classes)
    assert jnp.allclose(out3, ref3, atol=1e-4, rtol=1e-4), "mismatch vs reference (cfg 3)"

    print("KERNEL_OK")
</pallas_src>

<mosaic_0001>
module attributes {stable_mosaic.version = 11 : i64} {
  func.func @kernel(%arg0: i32, %arg1: memref<8x8x96xf32, #tpu.memory_space<vmem>>, %arg2: memref<32x8xf32, #tpu.memory_space<vmem>>, %arg3: memref<1x8xf32, #tpu.memory_space<vmem>>, %arg4: memref<8x8xf32, #tpu.memory_space<vmem>>) attributes {dimension_semantics = [#tpu.dimension_semantics<parallel>], iteration_bounds = array<i64: 1>, scalar_prefetch = 0 : i64, scratch_operands = 0 : i64, tpu.core_type = #tpu.core_type<tc>, window_params = [{transform_indices = @transform_0, window_bounds = array<i64: 8, 8, 96>}, {pipeline_mode = #tpu.pipeline_mode<synchronous>, transform_indices = @transform_1, window_bounds = array<i64: 32, 8>}, {pipeline_mode = #tpu.pipeline_mode<synchronous>, transform_indices = @transform_2, window_bounds = array<i64: 1, 8>}, {transform_indices = @transform_3, window_bounds = array<i64: 8, 8>}]} {
    %c0 = arith.constant 0 : index
    %c0_0 = arith.constant 0 : index
    %c0_1 = arith.constant 0 : index
    %0 = vector.load %arg1[%c0, %c0_0, %c0_1] : memref<8x8x96xf32, #tpu.memory_space<vmem>>, vector<8x8x32xf32>
    %cst = arith.constant dense<0.000000e+00> : vector<8x32xf32>
    %1 = vector.multi_reduction <add>, %0, %cst [1] : vector<8x8x32xf32> to vector<8x32xf32>
    %cst_2 = arith.constant 8.000000e+00 : f32
    %2 = vector.broadcast %cst_2 : f32 to vector<8x32xf32>
    %3 = arith.divf %1, %2 : vector<8x32xf32>
    %cst_3 = arith.constant dense<0.000000e+00> : vector<8xf32>
    %4 = vector.multi_reduction <add>, %3, %cst_3 [1] : vector<8x32xf32> to vector<8xf32>
    %5 = vector.shape_cast %4 : vector<8xf32> to vector<8x1xf32>
    %cst_4 = arith.constant 3.200000e+01 : f32
    %6 = vector.broadcast %cst_4 : f32 to vector<8x1xf32>
    %7 = arith.divf %5, %6 : vector<8x1xf32>
    %8 = vector.broadcast %7 : vector<8x1xf32> to vector<8x32xf32>
    %9 = arith.subf %3, %8 : vector<8x32xf32>
    %10 = vector.broadcast %7 : vector<8x1xf32> to vector<8x32xf32>
    %11 = arith.subf %3, %10 : vector<8x32xf32>
    %12 = arith.mulf %9, %11 : vector<8x32xf32>
    %cst_5 = arith.constant dense<0.000000e+00> : vector<8xf32>
    %13 = vector.multi_reduction <add>, %12, %cst_5 [1] : vector<8x32xf32> to vector<8xf32>
    %14 = vector.shape_cast %13 : vector<8xf32> to vector<8x1xf32>
    %cst_6 = arith.constant 3.200000e+01 : f32
    %15 = vector.broadcast %cst_6 : f32 to vector<8x1xf32>
    %16 = arith.divf %14, %15 : vector<8x1xf32>
    %17 = vector.broadcast %7 : vector<8x1xf32> to vector<8x32xf32>
    %18 = arith.subf %3, %17 : vector<8x32xf32>
    %cst_7 = arith.constant 9.99999974E-6 : f32
    %19 = vector.broadcast %cst_7 : f32 to vector<8x1xf32>
    %20 = arith.addf %16, %19 : vector<8x1xf32>
    %21 = math.rsqrt %20 : vector<8x1xf32>
    %22 = vector.broadcast %21 : vector<8x1xf32> to vector<8x32xf32>
    %23 = arith.mulf %18, %22 : vector<8x32xf32>
    %c0_8 = arith.constant 0 : index
    %c0_9 = arith.constant 0 : index
    %24 = vector.load %arg2[%c0_8, %c0_9] : memref<32x8xf32, #tpu.memory_space<vmem>>, vector<32x8xf32>
    %cst_10 = arith.constant dense<0.000000e+00> : vector<8x8xf32>
    %25 = tpu.matmul %23, %24, %cst_10 {dimension_numbers = #tpu.dot_dimension_numbers<[1], [0], [0], [1], [0, 0, 1, 1], [], []>} : vector<8x32xf32>, vector<32x8xf32>, vector<8x8xf32> -> vector<8x8xf32>
    %c0_11 = arith.constant 0 : index
    %c0_12 = arith.constant 0 : index
    %26 = vector.load %arg3[%c0_11, %c0_12] : memref<1x8xf32, #tpu.memory_space<vmem>>, vector<1x8xf32>
    %27 = vector.broadcast %26 : vector<1x8xf32> to vector<8x8xf32>
    %28 = arith.addf %25, %27 : vector<8x8xf32>
    %c0_13 = arith.constant 0 : index
    %c0_14 = arith.constant 0 : index
    %29 = vector.load %arg4[%c0_13, %c0_14] : memref<8x8xf32, #tpu.memory_space<vmem>>, vector<8x8xf32>
    tpu.vector_store %arg4[%c0_13, %c0_14], %28 {strides = array<i32>} : memref<8x8xf32, #tpu.memory_space<vmem>>, vector<8x8xf32>,
    return
  }
  func.func @transform_0(%arg0: i32) -> (i32, i32, i32) {
    %c0_i32 = arith.constant 0 : i32
    %c0_i32_0 = arith.constant 0 : i32
    %c0_i32_1 = arith.constant 0 : i32
    return %arg0, %c0_i32, %c0_i32_0 : i32, i32, i32
  }
  func.func @transform_1(%arg0: i32) -> (i32, i32) {
    %c0_i32 = arith.constant 0 : i32
    %c0_i32_0 = arith.constant 0 : i32
    %c0_i32_1 = arith.constant 0 : i32
    return %c0_i32, %c0_i32_0 : i32, i32
  }
  func.func @transform_2(%arg0: i32) -> (i32, i32) {
    %c0_i32 = arith.constant 0 : i32
    %c0_i32_0 = arith.constant 0 : i32
    %c0_i32_1 = arith.constant 0 : i32
    return %c0_i32, %c0_i32_0 : i32, i32
  }
  func.func @transform_3(%arg0: i32) -> (i32, i32) {
    %c0_i32 = arith.constant 0 : i32
    %c0_i32_0 = arith.constant 0 : i32
    return %arg0, %c0_i32 : i32, i32
  }
}

</mosaic_0001>

<bundles_post_ra>
// kernel: tpu_custom_call.1
= control target key start
LH: loop header
LB: loop body
LE: loop exit
PB: predicated region body
PF: predicated region fallthrough
CT: control target
= control target key end

     0   :  { %8 = vsyncpa [#allocation3], 0  ;;  %s517_s0 = inlined_call_operand.hbm [shape: f32[8,8,96], index: 0, kind: input, shape index: {}]   ;;  %s518_s1 = inlined_call_operand.vmem [shape: f32[32,8], index: 1, kind: input, shape index: {}]   ;;  %s519_s2 = inlined_call_operand.vmem [shape: f32[1,8], index: 2, kind: input, shape index: {}]   ;;  %s520_s3 = inlined_call_operand.hbm [shape: f32[8,8], index: 3, kind: output, shape index: {}]  }
   0x1   :  { %9 = vsyncpa [#allocation4], 0  ;;  %s419_s12 = smov [#allocation2]   ;;  %s371_s16 = scalar_lea.hbm %s517_s0, 1024 }
   0x2   :  { %s15_s13 = sshll.u32 %s419_s12, 4  ;;  %p372_p0 = scmp.ne.s32.totalorder %s517_s0, %s371_s16  ;;  %s16_s13 = int_to_ptr.vmem [resolvable:$true] %s15_s13 }
   0x3   :  { %p375_p1 = scmp.lt.u32.totalorder %s371_s16, %s517_s0 }
   0x5   :  { %p377_p2 = pnand %p375_p1, %p372_p0 }
   0x7   :  { %380 = shalt.err (!%p377_p2)
}
   0x8   :  { %s381_s21 = scalar_lea.vmem %s16_s13, 1024  ;;  %p386_p4 = scmp.lt.s32.totalorder %s16_s13, %s16_s13 }
   0x9   :  { %p382_p3 = scmp.ne.s32.totalorder %s16_s13, %s381_s21  ;;  %p387_p5 = scmp.lt.s32.totalorder %s381_s21, %s381_s21 }
   0xb   :  { %p388_p6 = por %p387_p5, %p386_p4 }
   0xd   :  { %p389_p7 = pnand %p388_p6, %p382_p3 }
   0xf   :  { %392 = shalt.err (!%p389_p7)
}
  0x10   :  { %s420_s22 = smov 128   ;;  %s421_s23 = smov 8  }
  0x11   :  { %21 = dma.hbm_to_vmem [thread:$0]  %s517_s0, 1024, %s16_s13, [#allocation3], %s420_s22, %s420_s22, %s421_s23  }
  0x12   :  { %415 = dma.done.wait [#allocation3], 1024  }
  0x13   :  { %416 = vsyncadd [#allocation3], 4294966272  ;;  %vm37_vm0 = vcmask 261120   ;;  %v29_v0 = vld [vmem:[#allocation2] sm:$0xff]  ;;  %v30_v1 = vld [vmem:[#allocation2 + $0x8] sm:$0xff]  ;;  %vm111_vm1 = vcmask 1041409  }
  0x14   :  { %v31_v2 = vld [vmem:[#allocation2 + $0x10] sm:$0xff]  ;;  %v32_v3 = vld [vmem:[#allocation2 + $0x18] sm:$0xff]  ;;  %v33_v4 = vld [vmem:[#allocation2 + $0x20] sm:$0xff]  ;;  %v38_v6 = vsel %vm37_vm0, %v29_v0, 0.0  ;;  %v45_v7 = vsel %vm37_vm0, %v30_v1, 0.0  ;;  %vm113_vm2 = vcmask 1042434  }
  0x15   :  { %v34_v5 = vld [vmem:[#allocation2 + $0x28] sm:$0xff]  ;;  %v52_v8 = vsel %vm37_vm0, %v31_v2, 0.0  ;;  %v35_v9 = vld [vmem:[#allocation2 + $0x30] sm:$0xff]  ;;  %v36_v10 = vld [vmem:[#allocation2 + $0x38] sm:$0xff]  ;;  %v39_v11 = vrot.slane %v38_v6, 4  ;;  %v46_v12 = vrot.slane %v45_v7, 4 }
  0x16   :  { %v53_v13 = vrot.slane %v52_v8, 4  ;;  %v59_v14 = vsel %vm37_vm0, %v32_v3, 0.0  ;;  %v66_v16 = vsel %vm37_vm0, %v33_v4, 0.0  ;;  %v73_v17 = vsel %vm37_vm0, %v34_v5, 0.0  ;;  %s425_s7 = smov [#allocation5]  }
  0x17   :  { %v60_v15 = vrot.slane %v59_v14, 4  ;;  %v80_v18 = vsel %vm37_vm0, %v35_v9, 0.0  ;;  %v40_v19 = vadd.f32 %v39_v11, %v38_v6  ;;  %v47_v20 = vadd.f32 %v46_v12, %v45_v7  ;;  %s329_s8 = sshll.u32 %s425_s7, 4  ;;  %s330_s8 = int_to_ptr.vmem [resolvable:$true] %s329_s8 }
  0x18   :  { %v54_v21 = vadd.f32 %v53_v13, %v52_v8  ;;  %v67_v22 = vrot.slane %v66_v16, 4  ;;  %v74_v24 = vrot.slane %v73_v17, 4  ;;  %v81_v25 = vrot.slane %v80_v18, 4  ;;  %s393_s9 = scalar_lea.vmem %s330_s8, 128  ;;  %p398_p9 = scmp.lt.s32.totalorder %s330_s8, %s330_s8 }
  0x19   :  { %v61_v23 = vadd.f32 %v60_v15, %v59_v14  ;;  %v87_v26 = vsel %vm37_vm0, %v36_v10, 0.0  ;;  %v41_v27 = vrot.slane %v40_v19, 2  ;;  %v48_v28 = vrot.slane %v47_v20, 2  ;;  %p394_p8 = scmp.ne.s32.totalorder %s330_s8, %s393_s9  ;;  %p399_p10 = scmp.lt.s32.totalorder %s393_s9, %s393_s9 }
  0x1a   :  { %v55_v29 = vrot.slane %v54_v21, 2  ;;  %v68_v30 = vadd.f32 %v67_v22, %v66_v16  ;;  %v75_v32 = vadd.f32 %v74_v24, %v73_v17  ;;  %v82_v33 = vadd.f32 %v81_v25, %v80_v18 }
  0x1b   :  { %v62_v31 = vrot.slane %v61_v23, 2  ;;  %v88_v34 = vrot.slane %v87_v26, 4  ;;  %vm115_vm3 = vcmask 1043459   ;;  %v42_v35 = vadd.f32 %v41_v27, %v40_v19  ;;  %p400_p11 = por %p399_p10, %p398_p9 }
  0x1c   :  { %v49_v36 = vadd.f32 %v48_v28, %v47_v20  ;;  %v56_v37 = vadd.f32 %v55_v29, %v54_v21  ;;  %v69_v38 = vrot.slane %v68_v30, 2  ;;  %v76_v40 = vrot.slane %v75_v32, 2 }
  0x1d   :  { %v63_v39 = vadd.f32 %v62_v31, %v61_v23  ;;  %v83_v41 = vrot.slane %v82_v33, 2  ;;  %v89_v42 = vadd.f32 %v88_v34, %v87_v26  ;;  %v43_v43 = vrot.slane %v42_v35, 1  ;;  %p401_p12 = pnand %p400_p11, %p394_p8 }
  0x1e   :  { %v50_v44 = vrot.slane %v49_v36, 1  ;;  %v57_v45 = vrot.slane %v56_v37, 1  ;;  %v70_v46 = vadd.f32 %v69_v38, %v68_v30  ;;  %v77_v48 = vadd.f32 %v76_v40, %v75_v32 }
  0x1f   :  { %v64_v47 = vrot.slane %v63_v39, 1  ;;  %v84_v49 = vadd.f32 %v83_v41, %v82_v33  ;;  %v90_v50 = vrot.slane %v89_v42, 2  ;;  %v44_v51 = vadd.f32 %v43_v43, %v42_v35 }
  0x20   :  { %v51_v52 = vadd.f32 %v50_v44, %v49_v36  ;;  %v58_v53 = vadd.f32 %v57_v45, %v56_v37  ;;  %v71_v54 = vrot.slane %v70_v46, 1  ;;  %v78_v56 = vrot.slane %v77_v48, 1 }
  0x21   :  { %v65_v55 = vadd.f32 %v64_v47, %v63_v39  ;;  %v85_v57 = vrot.slane %v84_v49, 1  ;;  %v91_v58 = vadd.f32 %v90_v50, %v89_v42  ;;  %v95_v60 = vmul.f32 0.125, %v44_v51 }
  0x22   :  { %v72_v59 = vadd.f32 %v71_v54, %v70_v46  ;;  %v96_v61 = vmul.f32 0.125, %v51_v52  ;;  %v97_v62 = vmul.f32 0.125, %v58_v53  ;;  %v79_v63 = vadd.f32 %v78_v56, %v77_v48  ;;  %v216_v56 = vld [vmem:[%s518_s1] sm:$0xff] }
  0x23   :  { %v86_v0 = vadd.f32 %v85_v57, %v84_v49  ;;  %v92_v1 = vrot.slane %v91_v58, 1  ;;  %v98_v2 = vmul.f32 0.125, %v65_v55  ;;  %vm117_vm4 = vcmask 1044484   ;;  %v217_v57 = vld [vmem:[%s518_s1 + $0x8] sm:$0xff] }
  0x24   :  { %v99_v3 = vmul.f32 0.125, %v72_v59  ;;  %v112_v4 = vsel %vm111_vm1, %v96_v61, %v95_v60  ;;  %vm119_vm5 = vcmask 1045509   ;;  %v100_v6 = vmul.f32 0.125, %v79_v63 }
  0x25   :  { %v93_v5 = vadd.f32 %v92_v1, %v91_v58  ;;  %v101_v7 = vmul.f32 0.125, %v86_v0  ;;  %v114_v8 = vsel %vm113_vm2, %v97_v62, %v112_v4  ;;  %vm121_vm6 = vcmask 1046534   ;;  %v218_v58 = vld [vmem:[%s518_s1 + $0x10] sm:$0xff] }
  0x26   :  { %v116_v9 = vsel %vm115_vm3, %v98_v2, %v114_v8  ;;  %vm123_vm7 = vcmask 1047559   ;;  %v422_v59 = vmov 0.0|0.0   ;;  %vm423_vm8 = vmmov 0  }
  0x27   :  { %v102_v10 = vmul.f32 0.125, %v93_v5  ;;  %v118_v11 = vsel %vm117_vm4, %v99_v3, %v116_v9  ;;  %356 = vmatprep.subr.bf16.mxu0 %v422_v59  ;;  %vm321_vm9 = vcmask 64512  }
  0x28   :  { %v120_v12 = vsel %vm119_vm5, %v100_v6, %v118_v11 }
  0x29   :  { %v122_v13 = vsel %vm121_vm6, %v101_v7, %v120_v12 }
  0x2a   :  { %v124_v14 = vsel %vm123_vm7, %v102_v10, %v122_v13 }
  0x2b   :  { %v126_v15 = vsel %vm37_vm0, %v124_v14, 0.0 }
  0x2c   :  { %127 = vadd.xlane.f32.xlu0 %v126_v15 }
  0xb9   :  { %v128_v16 = vpop.xlane.xlu0 %127 }
  0xba   :  { %v130_v17 = vmul.f32 0.03125, %v128_v16 }
  0xbc   :  { %v132_v18 = vrot.slane %v130_v17, 1  ;;  %v133_v19 = vrot.slane %v130_v17, 2  ;;  %v134_v20 = vrot.slane %v130_v17, 3  ;;  %v135_v21 = vrot.slane %v130_v17, 4 }
  0xbd   :  { %v136_v22 = vrot.slane %v130_v17, 5  ;;  %v137_v23 = vrot.slane %v130_v17, 6  ;;  %v138_v24 = vrot.slane %v130_v17, 7  ;;  %v147_v25 = vsub.f32 %v95_v60, %v130_v17 }
  0xbe   :  { %v148_v26 = vsub.f32 %v96_v61, %v132_v18  ;;  %v149_v27 = vsub.f32 %v97_v62, %v133_v19  ;;  %v150_v28 = vsub.f32 %v98_v2, %v134_v20  ;;  %v151_v29 = vsub.f32 %v99_v3, %v135_v21  ;;  %v219_v61 = vld [vmem:[%s518_s1 + $0x18] sm:$0xff] }
  0xbf   :  { %v152_v30 = vsub.f32 %v100_v6, %v136_v22  ;;  %v153_v31 = vsub.f32 %v101_v7, %v137_v23  ;;  %v154_v32 = vsub.f32 %v102_v10, %v138_v24  ;;  %v155_v37 = vmul.f32 %v147_v25, %v147_v25 }
  0xc0   :  { %v156_v33 = vmul.f32 %v148_v26, %v148_v26  ;;  %v157_v34 = vmul.f32 %v149_v27, %v149_v27  ;;  %v158_v35 = vmul.f32 %v150_v28, %v150_v28  ;;  %v159_v36 = vmul.f32 %v151_v29, %v151_v29 }
  0xc1   :  { %v160_v38 = vmul.f32 %v152_v30, %v152_v30  ;;  %v161_v41 = vmul.f32 %v153_v31, %v153_v31  ;;  %v162_v42 = vmul.f32 %v154_v32, %v154_v32  ;;  %v357_v60 = vpack.c.bf16 %v217_v57, %v216_v56 }
  0xc2   :  { %v171_v39 = vrot.slane %v156_v33, 7  ;;  %v173_v40 = vrot.slane %v157_v34, 6  ;;  %v175_v44 = vrot.slane %v158_v35, 5  ;;  %v177_v46 = vrot.slane %v159_v36, 4 }
  0xc3   :  { %v179_v48 = vrot.slane %v160_v38, 3  ;;  %v181_v50 = vrot.slane %v161_v41, 2  ;;  %v183_v52 = vrot.slane %v162_v42, 1  ;;  %v424_v62 = vmov 0.0   ;;  %358 = vmatpush3.bf16.msra.mxu0 %v357_v60 }
  0xc4   :  { %v172_v43 = vsel %vm111_vm1, %v171_v39, %v155_v37  ;;  %353 = vmatprep.mubr.msk.f32.mxu0 %vm423_vm8, %v424_v62  ;;  %v360_v63 = vpack.c.bf16 %v219_v61, %v218_v58  ;;  %359 = vmatprep.subr.bf16.mxu0 %v422_v59 }
  0xc5   :  { %v174_v45 = vsel %vm113_vm2, %v173_v40, %v172_v43 }
  0xc6   :  { %v176_v47 = vsel %vm115_vm3, %v175_v44, %v174_v45 }
  0xc7   :  { %v178_v49 = vsel %vm117_vm4, %v177_v46, %v176_v47  ;;  %361 = vmatpush3.bf16.msra.mxu0 %v360_v63 }
  0xc8   :  { %v180_v51 = vsel %vm119_vm5, %v179_v48, %v178_v49 }
  0xc9   :  { %v182_v53 = vsel %vm121_vm6, %v181_v50, %v180_v51 }
  0xca   :  { %v184_v54 = vsel %vm123_vm7, %v183_v52, %v182_v53 }
  0xcb   :  { %v186_v55 = vsel %vm37_vm0, %v184_v54, 0.0 }
  0xcc   :  { %187 = vadd.xlane.f32.xlu0 %v186_v55 }
 0x159   :  { %v188_v0 = vpop.xlane.xlu0 %187 }
 0x15a   :  { %v189_v1 = vmul.f32 0.03125, %v188_v0 }
 0x15c   :  { %v190_v2 = vadd.f32 1e-05, %v189_v1 }
 0x15e   :  { %369 = vrsqrt.f32 %v190_v2 }
 0x168   :  { %v370_v3 = vpop.eup %369 }
 0x169   :  { %v193_v4 = vrot.slane %v370_v3, 1  ;;  %v194_v5 = vrot.slane %v370_v3, 2  ;;  %v195_v6 = vrot.slane %v370_v3, 3  ;;  %v196_v7 = vrot.slane %v370_v3, 4 }
 0x16a   :  { %v197_v8 = vrot.slane %v370_v3, 5  ;;  %v198_v9 = vrot.slane %v370_v3, 6  ;;  %v199_v10 = vrot.slane %v370_v3, 7  ;;  %v208_v15 = vmul.f32 %v370_v3, %v147_v25 }
 0x16b   :  { %v209_v11 = vmul.f32 %v193_v4, %v148_v26  ;;  %v210_v12 = vmul.f32 %v194_v5, %v149_v27  ;;  %v211_v13 = vmul.f32 %v195_v6, %v150_v28  ;;  %v212_v14 = vmul.f32 %v196_v7, %v151_v29 }
 0x16c   :  { %v213_v16 = vmul.f32 %v197_v8, %v152_v30  ;;  %v214_v19 = vmul.f32 %v198_v9, %v153_v31  ;;  %v215_v20 = vmul.f32 %v199_v10, %v154_v32  ;;  %v338_v31 = vld [vmem:[%s519_s2] ss:$0 sm:$0xff] }
 0x16d   :  { %v235_v17 = vrot.slane %v209_v11, 7  ;;  %v237_v18 = vrot.slane %v210_v12, 6  ;;  %v239_v22 = vrot.slane %v211_v13, 5  ;;  %v241_v24 = vrot.slane %v212_v14, 4 }
 0x16e   :  { %v243_v34 = vrot.slane %v213_v16, 3  ;;  %v245_v27 = vrot.slane %v214_v19, 2  ;;  %v247_v25 = vrot.slane %v215_v20, 1 }
 0x16f   :  { %v236_v21 = vsel %vm111_vm1, %v235_v17, %v208_v15 }
 0x170   :  { %v238_v23 = vsel %vm113_vm2, %v237_v18, %v236_v21 }
 0x171   :  { %v240_v33 = vsel %vm115_vm3, %v239_v22, %v238_v23 }
 0x172   :  { %v242_v26 = vsel %vm117_vm4, %v241_v24, %v240_v33 }
 0x173   :  { %v244_v28 = vsel %vm119_vm5, %v243_v34, %v242_v26 }
 0x174   :  { %v246_v29 = vsel %vm121_vm6, %v245_v27, %v244_v28 }
 0x175   :  { %v248_v30 = vsel %vm123_vm7, %v247_v25, %v246_v29 }
 0x176   :  { %354 = vmatmul.mubr.msk.f32.vlgmr.msra.gmra.mrb[0].mxu0 %vm37_vm0, %v248_v30 }
 0x249   :  { %v317_v32 = vpop.f32.mrb[0].mxu0 }
 0x24a   :  { %v318_v35 = vadd.f32 %v338_v31, %v317_v32  ;;  %v355_v36 = vpop.f32.mrb[1].mxu0 }
 0x24c   :  { %322 = vst.msk [vmem:[#allocation5] sm:$0xff] %vm321_vm9, %v318_v35 }
 0x24d   :  { %404 = shalt.err (!%p401_p12)
}
 0x24e   :  { %s405_s12 = scalar_lea.hbm %s520_s3, 128 }
 0x24f   :  { %p406_p13 = scmp.ne.s32.totalorder %s520_s3, %s405_s12  ;;  %p409_p0 = scmp.lt.u32.totalorder %s405_s12, %s520_s3 }
 0x251   :  { %p411_p1 = pnand %p409_p0, %p406_p13 }
 0x253   :  { %414 = shalt.err (!%p411_p1)
}
 0x254   :  { %332 = dma.vmem_to_hbm [thread:$0]  %s330_s8, 128, %s520_s3, [#allocation4]  }
 0x255   :  { %417 = dma.done.wait [#allocation4], 128  }
 0x256   :  { %418 = vsyncadd [#allocation4], 4294967168 }
 0x257   :  { %336 = vsyncpa [#allocation3], 1 }
 0x258   :  { %337 = vsyncpa [#allocation4], 1 }

</bundles_post_ra>
